<compile_context>
chip_gen: v7x
topology: tpu7x:2x2x1
jax: 0.10.0
libtpu: 0.0.40
codegen_flags: <defaults>
</compile_context>

<pallas_src>
import functools

import jax
import jax.numpy as jnp
from jax.experimental import pallas as pl
from jax.experimental.pallas import tpu as pltpu


# ---------------------------------------------------------------------------
# Pallas kernel
# ---------------------------------------------------------------------------
def mmoe_kernel(x_ref,
                w1f_ref, b1f_ref,            # fused layer-1 (experts ++ gates)
                we2t_ref, be2t_ref,          # block-diag expert layer-2, columns tiled T times
                wg2_ref, bg2_ref,            # block-diag gate layer-2
                gxd_ref,                     # (T*E, 2*T*E*e2) fused softmax num/den expansion (0/1)
                wt1_ref, bt1_ref,            # (T*E*e2, T*t1) tower layer-1, expert-sum folded in
                wt2_ref, bt2_ref,            # block-diag tower layer-2
                wc_ref, bc_ref,              # shared combination, tasks in lane dim
                out_ref,                     # (bt, T)
                *, num_experts, num_tasks, e1, e2):
    E, T = num_experts, num_tasks
    ne1 = E * e1            # lane offset of gate hidden block in h1
    nte2 = T * E * e2       # width of the task-tiled expert block

    x = x_ref[...]          # bf16 (cast in the wrapper)

    # ---- fused layer 1 for ALL experts and ALL gates: one wide GEMM --------
    h1 = jnp.dot(x, w1f_ref[...], preferred_element_type=jnp.float32) + b1f_ref[...]
    h1 = jnp.maximum(h1, 0.0)
    h_exp = h1[:, :ne1].astype(jnp.bfloat16)     # (bt, E*e1)   clean 0 offset
    h_gate = h1[:, ne1:].astype(jnp.bfloat16)    # (bt, T*g1)   clean 128 offset

    # ---- expert layer 2: block-diag GEMM with columns tiled over tasks ------
    exp_t = jnp.dot(h_exp, we2t_ref[...],
                    preferred_element_type=jnp.float32) + be2t_ref[...]
    exp_t = jnp.maximum(exp_t, 0.0)              # (bt, T*E*e2) already task-tiled

    # ---- gate layer 2: block-diag GEMM ---------------------------------------
    gl = jnp.dot(h_gate, wg2_ref[...],
                 preferred_element_type=jnp.float32) + bg2_ref[...]
    gl = jnp.maximum(gl, 0.0)                    # (bt, T*E)

    # ---- fused softmax + gate lane-expansion ---------------------------------
    # Global row-max over all T*E logits is exact per task (softmax shift-invariant).
    et = jnp.exp(gl - jnp.max(gl, axis=1, keepdims=True)).astype(jnp.bfloat16)
    nd = jnp.dot(et, gxd_ref[...], preferred_element_type=jnp.float32)  # (bt, 2*T*E*e2)
    num = nd[:, :nte2]                                                  # replicated numerators
    den = jnp.maximum(nd[:, nte2:], 1e-30)                              # per-task denominators
    grep = num * pl.reciprocal(den, approx=True)                        # (bt, T*E*e2)

    # ---- gated mixture + tower layer-1 (expert-sum folded into wt1) ----------
    prod = (exp_t * grep).astype(jnp.bfloat16)
    th = jnp.dot(prod, wt1_ref[...],
                 preferred_element_type=jnp.float32) + bt1_ref[...]
    th = jnp.maximum(th, 0.0)                    # (bt, T*t1)
    th = jnp.dot(th.astype(jnp.bfloat16), wt2_ref[...],
                 preferred_element_type=jnp.float32) + bt2_ref[...]
    th = jnp.maximum(th, 0.0)                    # (bt, T*t2)

    # ---- shared combination linear (tasks folded into lanes) + sigmoid -------
    logits = jnp.dot(th.astype(jnp.bfloat16), wc_ref[...],
                     preferred_element_type=jnp.float32) + bc_ref[...]   # (bt, T)
    out_ref[...] = jax.nn.sigmoid(logits).astype(out_ref.dtype)


# ---------------------------------------------------------------------------
# Wrapper: batch-tiled pallas_call
# ---------------------------------------------------------------------------
def _round_up(v, m):
    return ((v + m - 1) // m) * m


def mmoe_forward(x, fused, *, num_experts, num_tasks, e1, e2, block_b=2048):
    B, D = x.shape
    xb = x.astype(jnp.bfloat16)

    Bp = _round_up(B, 8)
    if Bp <= 16:
        bt = Bp
    else:
        # >=2 grid steps whenever the batch allows it (dual TensorCores on v7x),
        # capped at block_b to bound per-step VMEM (v5e scoped default is smallest).
        bt = min(block_b, _round_up(-(-Bp // 2), 8))
    nb = -(-Bp // bt)
    total = nb * bt
    if total != B:
        xb = jnp.pad(xb, ((0, total - B), (0, 0)))

    kernel = functools.partial(mmoe_kernel, num_experts=num_experts,
                               num_tasks=num_tasks, e1=e1, e2=e2)

    # Weights/biases: full-array blocks, constant index map -> VMEM-resident
    # across all batch grid steps.
    w_specs = [pl.BlockSpec(p.shape, lambda i: (0, 0)) for p in fused]

    # Advisory cost estimate for XLA's scheduler around the custom call.
    gemm_flops = 2 * total * sum(int(p.shape[0]) * int(p.shape[1])
                                 for p in fused if p.ndim == 2 and p.shape[0] > 1)
    bytes_accessed = (int(xb.size) * 2 + total * num_tasks * 4
                      + sum(int(p.size) * int(p.dtype.itemsize) for p in fused))
    transcendentals = total * (num_tasks * num_experts + num_tasks)

    out = pl.pallas_call(
        kernel,
        out_shape=jax.ShapeDtypeStruct((total, num_tasks), jnp.float32),
        grid=(nb,),
        in_specs=[pl.BlockSpec((bt, D), lambda i: (i, 0))] + w_specs,
        out_specs=pl.BlockSpec((bt, num_tasks), lambda i: (i, 0)),
        compiler_params=pltpu.CompilerParams(
            dimension_semantics=("parallel",),
            vmem_limit_bytes=32 * 1024 * 1024),
        cost_estimate=pl.CostEstimate(
            flops=gemm_flops,
            transcendentals=transcendentals,
            bytes_accessed=bytes_accessed),
    )(xb, *fused)

    out = out[:B]
    # mirror the PyTorch module: list of (B, 1) outputs, one per task
    return [out[:, t:t + 1] for t in range(num_tasks)]


# ---------------------------------------------------------------------------
# Parameter construction (nn.Linear-style uniform init) and fusion
# ---------------------------------------------------------------------------
def _linear_init(key, fan_in, fan_out):
    kw, kb = jax.random.split(key)
    bound = 1.0 / (fan_in ** 0.5)
    w = jax.random.uniform(kw, (fan_in, fan_out), jnp.float32, -bound, bound)
    b = jax.random.uniform(kb, (fan_out,), jnp.float32, -bound, bound)
    return w, b


def make_params(key, *, num_experts, num_tasks,
                experts_hidden_units, gates_hidden_units, towers_hidden_units):
    keys = iter(jax.random.split(key, 64))

    def stacked(n, d_in, d_out):
        ws, bs = zip(*[_linear_init(next(keys), d_in, d_out) for _ in range(n)])
        return jnp.stack(ws), jnp.stack(bs)

    e0, e1, e2 = experts_hidden_units
    g0, g1, g2 = gates_hidden_units
    t0, t1, t2 = towers_hidden_units

    we1, be1 = stacked(num_experts, e0, e1)
    we2, be2 = stacked(num_experts, e1, e2)
    wg1, bg1 = stacked(num_tasks, g0, g1)
    wg2, bg2 = stacked(num_tasks, g1, g2)
    wt1, bt1 = stacked(num_tasks, t0, t1)
    wt2, bt2 = stacked(num_tasks, t1, t2)
    wc, bc = _linear_init(next(keys), t2, 1)

    return (we1, be1, we2, be2, wg1, bg1, wg2, bg2, wt1, bt1, wt2, bt2, wc, bc)


def fuse_params(raw, *, num_experts, num_tasks):
    """Build the fused / block-diagonal weights consumed by the kernel (bf16)."""
    (we1, be1, we2, be2, wg1, bg1, wg2, bg2, wt1, bt1, wt2, bt2, wc, bc) = raw
    E, T = num_experts, num_tasks
    e2 = we2.shape[2]
    bd = jax.scipy.linalg.block_diag
    bf16 = lambda a: a.astype(jnp.bfloat16)

    # layer-1: all expert first layers then all gate first layers, concatenated
    w1f = jnp.concatenate([we1[i] for i in range(E)] + [wg1[t] for t in range(T)], axis=1)
    b1f = jnp.concatenate([be1[i] for i in range(E)] + [bg1[t] for t in range(T)])[None, :]

    # expert layer-2: block-diag, columns tiled T times so the GEMM emits the
    # task-tiled activations directly (no in-kernel concatenate)
    we2_bd = bd(*[we2[i] for i in range(E)])                      # (E*e1, E*e2)
    we2_t = jnp.concatenate([we2_bd] * T, axis=1)                 # (E*e1, T*E*e2)
    be2_t = jnp.tile(be2.reshape(1, -1), (1, T))                  # (1, T*E*e2)

    wg2_bd = bd(*[wg2[t] for t in range(T)])                      # (T*g1, T*E)
    bg2f = bg2.reshape(1, -1)

    # fused softmax expansion: [numerator | denominator] 0/1 matrix (exact in bf16)
    eye = jnp.eye(T * E, dtype=jnp.float32)
    gnum = jnp.repeat(eye, e2, axis=1)                            # (T*E, T*E*e2)
    task_of = jnp.repeat(jnp.eye(T, dtype=jnp.float32), E, axis=0)  # (T*E, T)
    gden = jnp.repeat(task_of, E * e2, axis=1)                    # (T*E, T*E*e2)
    gxd = jnp.concatenate([gnum, gden], axis=1)                   # (T*E, 2*T*E*e2)

    # tower layer-1 with the expert-sum folded in: tile wt1[t] over the E expert
    # blocks, then block-diag across tasks
    wt1x = bd(*[jnp.tile(wt1[t], (E, 1)) for t in range(T)])      # (T*E*e2, T*t1)
    bt1f = bt1.reshape(1, -1)
    wt2_bd = bd(*[wt2[t] for t in range(T)])                      # (T*t1, T*t2)
    bt2f = bt2.reshape(1, -1)

    wcf = bd(*([wc] * T))                                         # (T*t2, T)
    bcf = jnp.tile(bc.reshape(1, 1), (1, T))                      # (1, T)

    return (bf16(w1f), b1f,
            bf16(we2_t), be2_t,
            bf16(wg2_bd), bg2f,
            bf16(gxd),
            bf16(wt1x), bt1f,
            bf16(wt2_bd), bt2f,
            bf16(wcf), bcf)


# ---------------------------------------------------------------------------
# Pure-JAX reference (f32) for correctness checking
# ---------------------------------------------------------------------------
def mmoe_reference(x, raw, *, num_experts, num_tasks):
    (we1, be1, we2, be2, wg1, bg1, wg2, bg2, wt1, bt1, wt2, bt2, wc, bc) = raw
    relu = lambda v: jnp.maximum(v, 0.0)

    def mlp2(inp, w1, b1, w2, b2):
        return relu(relu(inp @ w1 + b1) @ w2 + b2)

    experts = [mlp2(x, we1[i], be1[i], we2[i], be2[i]) for i in range(num_experts)]
    outs = []
    for t in range(num_tasks):
        gate = jax.nn.softmax(mlp2(x, wg1[t], bg1[t], wg2[t], bg2[t]), axis=1)
        mix = sum(gate[:, i:i + 1] * experts[i] for i in range(num_experts))
        tower = mlp2(mix, wt1[t], bt1[t], wt2[t], bt2[t])
        outs.append(jax.nn.sigmoid(tower @ wc + bc))
    return outs


# ---------------------------------------------------------------------------
# Main
# ---------------------------------------------------------------------------
if __name__ == "__main__":
    # input dim 32; experts: 32->32->16; gates: 32->16->num_experts;
    # towers: 16->16->8; combination: Linear(8, 1)
    num_experts = 4
    num_tasks = 2
    experts_hidden_units = [32, 32, 16]
    gates_hidden_units = [32, 16, num_experts]   # gate output dim == num_experts
    towers_hidden_units = [16, 16, 8]            # tower input dim == expert output dim

    B, D = 8, 32
    key = jax.random.PRNGKey(0)
    kx, kp = jax.random.split(key)
    x = jax.random.normal(kx, (B, D), jnp.float32)

    raw = make_params(kp,
                      num_experts=num_experts, num_tasks=num_tasks,
                      experts_hidden_units=experts_hidden_units,
                      gates_hidden_units=gates_hidden_units,
                      towers_hidden_units=towers_hidden_units)
    fused = fuse_params(raw, num_experts=num_experts, num_tasks=num_tasks)

    outs = mmoe_forward(x, fused,
                        num_experts=num_experts, num_tasks=num_tasks,
                        e1=experts_hidden_units[1], e2=experts_hidden_units[2])
    outs = [jax.block_until_ready(o) for o in outs]

    refs = mmoe_reference(x, raw, num_experts=num_experts, num_tasks=num_tasks)

    assert len(outs) == num_tasks
    for o, r in zip(outs, refs):
        assert o.shape == (B, 1)
        assert bool(jnp.all((o >= 0.0) & (o <= 1.0)))
        # bf16 matmul operands + approx reciprocal -> loose tolerance
        assert bool(jnp.max(jnp.abs(o - r)) < 5e-2)

    print("KERNEL_OK")
</pallas_src>

<mosaic_0001>
module attributes {stable_mosaic.version = 11 : i64} {
  func.func @mmoe_kernel(%arg0: i32, %arg1: memref<8x32xbf16, #tpu.memory_space<vmem>>, %arg2: memref<32x160xbf16, #tpu.memory_space<vmem>>, %arg3: memref<1x160xf32, #tpu.memory_space<vmem>>, %arg4: memref<128x128xbf16, #tpu.memory_space<vmem>>, %arg5: memref<1x128xf32, #tpu.memory_space<vmem>>, %arg6: memref<32x8xbf16, #tpu.memory_space<vmem>>, %arg7: memref<1x8xf32, #tpu.memory_space<vmem>>, %arg8: memref<8x256xbf16, #tpu.memory_space<vmem>>, %arg9: memref<128x32xbf16, #tpu.memory_space<vmem>>, %arg10: memref<1x32xf32, #tpu.memory_space<vmem>>, %arg11: memref<32x16xbf16, #tpu.memory_space<vmem>>, %arg12: memref<1x16xf32, #tpu.memory_space<vmem>>, %arg13: memref<16x2xbf16, #tpu.memory_space<vmem>>, %arg14: memref<1x2xf32, #tpu.memory_space<vmem>>, %arg15: memref<8x2xf32, #tpu.memory_space<vmem>>) attributes {dimension_semantics = [#tpu.dimension_semantics<parallel>], iteration_bounds = array<i64: 1>, scalar_prefetch = 0 : i64, scratch_operands = 0 : i64, tpu.core_type = #tpu.core_type<tc>, window_params = [{transform_indices = @transform_0, window_bounds = array<i64: 8, 32>}, {pipeline_mode = #tpu.pipeline_mode<synchronous>, transform_indices = @transform_1, window_bounds = array<i64: 32, 160>}, {pipeline_mode = #tpu.pipeline_mode<synchronous>, transform_indices = @transform_2, window_bounds = array<i64: 1, 160>}, {pipeline_mode = #tpu.pipeline_mode<synchronous>, transform_indices = @transform_3, window_bounds = array<i64: 128, 128>}, {pipeline_mode = #tpu.pipeline_mode<synchronous>, transform_indices = @transform_4, window_bounds = array<i64: 1, 128>}, {pipeline_mode = #tpu.pipeline_mode<synchronous>, transform_indices = @transform_5, window_bounds = array<i64: 32, 8>}, {pipeline_mode = #tpu.pipeline_mode<synchronous>, transform_indices = @transform_6, window_bounds = array<i64: 1, 8>}, {pipeline_mode = #tpu.pipeline_mode<synchronous>, transform_indices = @transform_7, window_bounds = array<i64: 8, 256>}, {pipeline_mode = #tpu.pipeline_mode<synchronous>, transform_indices = @transform_8, window_bounds = array<i64: 128, 32>}, {pipeline_mode = #tpu.pipeline_mode<synchronous>, transform_indices = @transform_9, window_bounds = array<i64: 1, 32>}, {pipeline_mode = #tpu.pipeline_mode<synchronous>, transform_indices = @transform_10, window_bounds = array<i64: 32, 16>}, {pipeline_mode = #tpu.pipeline_mode<synchronous>, transform_indices = @transform_11, window_bounds = array<i64: 1, 16>}, {pipeline_mode = #tpu.pipeline_mode<synchronous>, transform_indices = @transform_12, window_bounds = array<i64: 16, 2>}, {pipeline_mode = #tpu.pipeline_mode<synchronous>, transform_indices = @transform_13, window_bounds = array<i64: 1, 2>}, {transform_indices = @transform_14, window_bounds = array<i64: 8, 2>}]} {
    %c0 = arith.constant 0 : index
    %c0_0 = arith.constant 0 : index
    %0 = vector.load %arg1[%c0, %c0_0] : memref<8x32xbf16, #tpu.memory_space<vmem>>, vector<8x32xbf16>
    %c0_1 = arith.constant 0 : index
    %c0_2 = arith.constant 0 : index
    %1 = vector.load %arg2[%c0_1, %c0_2] : memref<32x160xbf16, #tpu.memory_space<vmem>>, vector<32x160xbf16>
    %cst = arith.constant dense<0.000000e+00> : vector<8x160xf32>
    %2 = tpu.matmul %0, %1, %cst {dimension_numbers = #tpu.dot_dimension_numbers<[1], [0], [0], [1], [0, 0, 1, 1], [], []>} : vector<8x32xbf16>, vector<32x160xbf16>, vector<8x160xf32> -> vector<8x160xf32>
    %c0_3 = arith.constant 0 : index
    %c0_4 = arith.constant 0 : index
    %3 = vector.load %arg3[%c0_3, %c0_4] : memref<1x160xf32, #tpu.memory_space<vmem>>, vector<1x160xf32>
    %4 = vector.broadcast %3 : vector<1x160xf32> to vector<8x160xf32>
    %5 = arith.addf %2, %4 : vector<8x160xf32>
    %cst_5 = arith.constant 0.000000e+00 : f32
    %6 = vector.broadcast %cst_5 : f32 to vector<8x160xf32>
    %7 = arith.maximumf %5, %6 : vector<8x160xf32>
    %8 = vector.extract_strided_slice %7 {offsets = [0, 0], sizes = [8, 128], strides = [1, 1]} : vector<8x160xf32> to vector<8x128xf32>
    %9 = arith.truncf %8 : vector<8x128xf32> to vector<8x128xbf16>
    %10 = vector.extract_strided_slice %7 {offsets = [0, 128], sizes = [8, 32], strides = [1, 1]} : vector<8x160xf32> to vector<8x32xf32>
    %11 = arith.truncf %10 : vector<8x32xf32> to vector<8x32xbf16>
    %c0_6 = arith.constant 0 : index
    %c0_7 = arith.constant 0 : index
    %12 = vector.load %arg4[%c0_6, %c0_7] : memref<128x128xbf16, #tpu.memory_space<vmem>>, vector<128x128xbf16>
    %cst_8 = arith.constant dense<0.000000e+00> : vector<8x128xf32>
    %13 = tpu.matmul %9, %12, %cst_8 {dimension_numbers = #tpu.dot_dimension_numbers<[1], [0], [0], [1], [0, 0, 1, 1], [], []>} : vector<8x128xbf16>, vector<128x128xbf16>, vector<8x128xf32> -> vector<8x128xf32>
    %c0_9 = arith.constant 0 : index
    %c0_10 = arith.constant 0 : index
    %14 = vector.load %arg5[%c0_9, %c0_10] : memref<1x128xf32, #tpu.memory_space<vmem>>, vector<1x128xf32>
    %15 = vector.broadcast %14 : vector<1x128xf32> to vector<8x128xf32>
    %16 = arith.addf %13, %15 : vector<8x128xf32>
    %cst_11 = arith.constant 0.000000e+00 : f32
    %17 = vector.broadcast %cst_11 : f32 to vector<8x128xf32>
    %18 = arith.maximumf %16, %17 : vector<8x128xf32>
    %c0_12 = arith.constant 0 : index
    %c0_13 = arith.constant 0 : index
    %19 = vector.load %arg6[%c0_12, %c0_13] : memref<32x8xbf16, #tpu.memory_space<vmem>>, vector<32x8xbf16>
    %cst_14 = arith.constant dense<0.000000e+00> : vector<8x8xf32>
    %20 = tpu.matmul %11, %19, %cst_14 {dimension_numbers = #tpu.dot_dimension_numbers<[1], [0], [0], [1], [0, 0, 1, 1], [], []>} : vector<8x32xbf16>, vector<32x8xbf16>, vector<8x8xf32> -> vector<8x8xf32>
    %c0_15 = arith.constant 0 : index
    %c0_16 = arith.constant 0 : index
    %21 = vector.load %arg7[%c0_15, %c0_16] : memref<1x8xf32, #tpu.memory_space<vmem>>, vector<1x8xf32>
    %22 = vector.broadcast %21 : vector<1x8xf32> to vector<8x8xf32>
    %23 = arith.addf %20, %22 : vector<8x8xf32>
    %cst_17 = arith.constant 0.000000e+00 : f32
    %24 = vector.broadcast %cst_17 : f32 to vector<8x8xf32>
    %25 = arith.maximumf %23, %24 : vector<8x8xf32>
    %cst_18 = arith.constant dense<0xFF800000> : vector<8xf32>
    %26 = vector.multi_reduction <maximumf>, %25, %cst_18 [1] : vector<8x8xf32> to vector<8xf32>
    %27 = vector.shape_cast %26 : vector<8xf32> to vector<8x1xf32>
    %28 = vector.broadcast %27 : vector<8x1xf32> to vector<8x8xf32>
    %29 = arith.subf %25, %28 : vector<8x8xf32>
    %30 = math.exp %29 : vector<8x8xf32>
    %31 = arith.truncf %30 : vector<8x8xf32> to vector<8x8xbf16>
    %c0_19 = arith.constant 0 : index
    %c0_20 = arith.constant 0 : index
    %32 = vector.load %arg8[%c0_19, %c0_20] : memref<8x256xbf16, #tpu.memory_space<vmem>>, vector<8x256xbf16>
    %cst_21 = arith.constant dense<0.000000e+00> : vector<8x256xf32>
    %33 = tpu.matmul %31, %32, %cst_21 {dimension_numbers = #tpu.dot_dimension_numbers<[1], [0], [0], [1], [0, 0, 1, 1], [], []>} : vector<8x8xbf16>, vector<8x256xbf16>, vector<8x256xf32> -> vector<8x256xf32>
    %34 = vector.extract_strided_slice %33 {offsets = [0, 0], sizes = [8, 128], strides = [1, 1]} : vector<8x256xf32> to vector<8x128xf32>
    %35 = vector.extract_strided_slice %33 {offsets = [0, 128], sizes = [8, 128], strides = [1, 1]} : vector<8x256xf32> to vector<8x128xf32>
    %cst_22 = arith.constant 1.000000e-30 : f32
    %36 = vector.broadcast %cst_22 : f32 to vector<8x128xf32>
    %37 = arith.maximumf %35, %36 : vector<8x128xf32>
    %38 = tpu.reciprocal %37 {approx = true} : vector<8x128xf32> -> vector<8x128xf32>
    %39 = arith.mulf %34, %38 : vector<8x128xf32>
    %40 = arith.mulf %18, %39 : vector<8x128xf32>
    %41 = arith.truncf %40 : vector<8x128xf32> to vector<8x128xbf16>
    %c0_23 = arith.constant 0 : index
    %c0_24 = arith.constant 0 : index
    %42 = vector.load %arg9[%c0_23, %c0_24] : memref<128x32xbf16, #tpu.memory_space<vmem>>, vector<128x32xbf16>
    %cst_25 = arith.constant dense<0.000000e+00> : vector<8x32xf32>
    %43 = tpu.matmul %41, %42, %cst_25 {dimension_numbers = #tpu.dot_dimension_numbers<[1], [0], [0], [1], [0, 0, 1, 1], [], []>} : vector<8x128xbf16>, vector<128x32xbf16>, vector<8x32xf32> -> vector<8x32xf32>
    %c0_26 = arith.constant 0 : index
    %c0_27 = arith.constant 0 : index
    %44 = vector.load %arg10[%c0_26, %c0_27] : memref<1x32xf32, #tpu.memory_space<vmem>>, vector<1x32xf32>
    %45 = vector.broadcast %44 : vector<1x32xf32> to vector<8x32xf32>
    %46 = arith.addf %43, %45 : vector<8x32xf32>
    %cst_28 = arith.constant 0.000000e+00 : f32
    %47 = vector.broadcast %cst_28 : f32 to vector<8x32xf32>
    %48 = arith.maximumf %46, %47 : vector<8x32xf32>
    %49 = arith.truncf %48 : vector<8x32xf32> to vector<8x32xbf16>
    %c0_29 = arith.constant 0 : index
    %c0_30 = arith.constant 0 : index
    %50 = vector.load %arg11[%c0_29, %c0_30] : memref<32x16xbf16, #tpu.memory_space<vmem>>, vector<32x16xbf16>
    %cst_31 = arith.constant dense<0.000000e+00> : vector<8x16xf32>
    %51 = tpu.matmul %49, %50, %cst_31 {dimension_numbers = #tpu.dot_dimension_numbers<[1], [0], [0], [1], [0, 0, 1, 1], [], []>} : vector<8x32xbf16>, vector<32x16xbf16>, vector<8x16xf32> -> vector<8x16xf32>
    %c0_32 = arith.constant 0 : index
    %c0_33 = arith.constant 0 : index
    %52 = vector.load %arg12[%c0_32, %c0_33] : memref<1x16xf32, #tpu.memory_space<vmem>>, vector<1x16xf32>
    %53 = vector.broadcast %52 : vector<1x16xf32> to vector<8x16xf32>
    %54 = arith.addf %51, %53 : vector<8x16xf32>
    %cst_34 = arith.constant 0.000000e+00 : f32
    %55 = vector.broadcast %cst_34 : f32 to vector<8x16xf32>
    %56 = arith.maximumf %54, %55 : vector<8x16xf32>
    %57 = arith.truncf %56 : vector<8x16xf32> to vector<8x16xbf16>
    %c0_35 = arith.constant 0 : index
    %c0_36 = arith.constant 0 : index
    %58 = vector.load %arg13[%c0_35, %c0_36] : memref<16x2xbf16, #tpu.memory_space<vmem>>, vector<16x2xbf16>
    %cst_37 = arith.constant dense<0.000000e+00> : vector<8x2xf32>
    %59 = tpu.matmul %57, %58, %cst_37 {dimension_numbers = #tpu.dot_dimension_numbers<[1], [0], [0], [1], [0, 0, 1, 1], [], []>} : vector<8x16xbf16>, vector<16x2xbf16>, vector<8x2xf32> -> vector<8x2xf32>
    %c0_38 = arith.constant 0 : index
    %c0_39 = arith.constant 0 : index
    %60 = vector.load %arg14[%c0_38, %c0_39] : memref<1x2xf32, #tpu.memory_space<vmem>>, vector<1x2xf32>
    %61 = vector.broadcast %60 : vector<1x2xf32> to vector<8x2xf32>
    %62 = arith.addf %59, %61 : vector<8x2xf32>
    %63 = arith.negf %62 : vector<8x2xf32>
    %64 = math.exp %63 : vector<8x2xf32>
    %cst_40 = arith.constant 1.000000e+00 : f32
    %65 = vector.broadcast %cst_40 : f32 to vector<8x2xf32>
    %66 = arith.addf %65, %64 : vector<8x2xf32>
    %67 = arith.divf %65, %66 : vector<8x2xf32>
    %c0_41 = arith.constant 0 : index
    %c0_42 = arith.constant 0 : index
    %68 = vector.load %arg15[%c0_41, %c0_42] : memref<8x2xf32, #tpu.memory_space<vmem>>, vector<8x2xf32>
    tpu.vector_store %arg15[%c0_41, %c0_42], %67 {strides = array<i32>} : memref<8x2xf32, #tpu.memory_space<vmem>>, vector<8x2xf32>,
    return
  }
  func.func @transform_0(%arg0: i32) -> (i32, i32) {
    %c0_i32 = arith.constant 0 : i32
    %c0_i32_0 = arith.constant 0 : i32
    return %arg0, %c0_i32 : i32, i32
  }
  func.func @transform_1(%arg0: i32) -> (i32, i32) {
    %c0_i32 = arith.constant 0 : i32
    %c0_i32_0 = arith.constant 0 : i32
    %c0_i32_1 = arith.constant 0 : i32
    return %c0_i32, %c0_i32_0 : i32, i32
  }
  func.func @transform_2(%arg0: i32) -> (i32, i32) {
    %c0_i32 = arith.constant 0 : i32
    %c0_i32_0 = arith.constant 0 : i32
    %c0_i32_1 = arith.constant 0 : i32
    return %c0_i32, %c0_i32_0 : i32, i32
  }
  func.func @transform_3(%arg0: i32) -> (i32, i32) {
    %c0_i32 = arith.constant 0 : i32
    %c0_i32_0 = arith.constant 0 : i32
    %c0_i32_1 = arith.constant 0 : i32
    return %c0_i32, %c0_i32_0 : i32, i32
  }
  func.func @transform_4(%arg0: i32) -> (i32, i32) {
    %c0_i32 = arith.constant 0 : i32
    %c0_i32_0 = arith.constant 0 : i32
    %c0_i32_1 = arith.constant 0 : i32
    return %c0_i32, %c0_i32_0 : i32, i32
  }
  func.func @transform_5(%arg0: i32) -> (i32, i32) {
    %c0_i32 = arith.constant 0 : i32
    %c0_i32_0 = arith.constant 0 : i32
    %c0_i32_1 = arith.constant 0 : i32
    return %c0_i32, %c0_i32_0 : i32, i32
  }
  func.func @transform_6(%arg0: i32) -> (i32, i32) {
    %c0_i32 = arith.constant 0 : i32
    %c0_i32_0 = arith.constant 0 : i32
    %c0_i32_1 = arith.constant 0 : i32
    return %c0_i32, %c0_i32_0 : i32, i32
  }
  func.func @transform_7(%arg0: i32) -> (i32, i32) {
    %c0_i32 = arith.constant 0 : i32
    %c0_i32_0 = arith.constant 0 : i32
    %c0_i32_1 = arith.constant 0 : i32
    return %c0_i32, %c0_i32_0 : i32, i32
  }
  func.func @transform_8(%arg0: i32) -> (i32, i32) {
    %c0_i32 = arith.constant 0 : i32
    %c0_i32_0 = arith.constant 0 : i32
    %c0_i32_1 = arith.constant 0 : i32
    return %c0_i32, %c0_i32_0 : i32, i32
  }
  func.func @transform_9(%arg0: i32) -> (i32, i32) {
    %c0_i32 = arith.constant 0 : i32
    %c0_i32_0 = arith.constant 0 : i32
    %c0_i32_1 = arith.constant 0 : i32
    return %c0_i32, %c0_i32_0 : i32, i32
  }
  func.func @transform_10(%arg0: i32) -> (i32, i32) {
    %c0_i32 = arith.constant 0 : i32
    %c0_i32_0 = arith.constant 0 : i32
    %c0_i32_1 = arith.constant 0 : i32
    return %c0_i32, %c0_i32_0 : i32, i32
  }
  func.func @transform_11(%arg0: i32) -> (i32, i32) {
    %c0_i32 = arith.constant 0 : i32
    %c0_i32_0 = arith.constant 0 : i32
    %c0_i32_1 = arith.constant 0 : i32
    return %c0_i32, %c0_i32_0 : i32, i32
  }
  func.func @transform_12(%arg0: i32) -> (i32, i32) {
    %c0_i32 = arith.constant 0 : i32
    %c0_i32_0 = arith.constant 0 : i32
    %c0_i32_1 = arith.constant 0 : i32
    return %c0_i32, %c0_i32_0 : i32, i32
  }
  func.func @transform_13(%arg0: i32) -> (i32, i32) {
    %c0_i32 = arith.constant 0 : i32
    %c0_i32_0 = arith.constant 0 : i32
    %c0_i32_1 = arith.constant 0 : i32
    return %c0_i32, %c0_i32_0 : i32, i32
  }
  func.func @transform_14(%arg0: i32) -> (i32, i32) {
    %c0_i32 = arith.constant 0 : i32
    %c0_i32_0 = arith.constant 0 : i32
    return %arg0, %c0_i32 : i32, i32
  }
}

</mosaic_0001>

<bundles_post_ra>
// kernel: tpu_custom_call.1
= control target key start
LH: loop header
LB: loop body
LE: loop exit
PB: predicated region body
PF: predicated region fallthrough
CT: control target
= control target key end

     0   :  { %v802_v1 = vmov 0   ;;  %v803_v2 = vmov 0.0   ;;  %vm85_vm0 = vcmask 261120   ;;  %vm804_vm1 = vmmov 0   ;;  %s1023_s1 = inlined_call_operand.vmem [shape: bf16[32,160], index: 1, kind: input, shape index: {}]   ;;  %s1024_s3 = inlined_call_operand.vmem [shape: bf16[128,128], index: 3, kind: input, shape index: {}]   ;;  %s1025_s0 = inlined_call_operand.vmem [shape: bf16[8,32], index: 0, kind: input, shape index: {}]   ;;  %s1026_s5 = inlined_call_operand.vmem [shape: bf16[32,8], index: 5, kind: input, shape index: {}]   ;;  %s1027_s2 = inlined_call_operand.vmem [shape: f32[1,160], index: 2, kind: input, shape index: {}]   ;;  %s1028_s6 = inlined_call_operand.vmem [shape: f32[1,8], index: 6, kind: input, shape index: {}]   ;;  %s1029_s7 = inlined_call_operand.vmem [shape: bf16[8,256], index: 7, kind: input, shape index: {}]   ;;  %s1030_s8 = inlined_call_operand.vmem [shape: bf16[128,32], index: 8, kind: input, shape index: {}]   ;;  %s1031_s10 = inlined_call_operand.vmem [shape: bf16[32,16], index: 10, kind: input, shape index: {}]   ;;  %s1032_s4 = inlined_call_operand.vmem [shape: f32[1,128], index: 4, kind: input, shape index: {}]   ;;  %s1033_s12 = inlined_call_operand.vmem [shape: bf16[16,2], index: 12, kind: input, shape index: {}]   ;;  %s1034_s9 = inlined_call_operand.vmem [shape: f32[1,32], index: 9, kind: input, shape index: {}]   ;;  %s1035_s11 = inlined_call_operand.vmem [shape: f32[1,16], index: 11, kind: input, shape index: {}]   ;;  %s1036_s13 = inlined_call_operand.vmem [shape: f32[1,2], index: 13, kind: input, shape index: {}]   ;;  %s1037_s14 = inlined_call_operand.vmem [shape: f32[8,2], index: 14, kind: output, shape index: {}]  }
   0x1   :  { %v765_v0 = vld [vmem:[%s1023_s1 + $0x4] ss:$8 sps:$4 sm:$0xff]   ;;  %121 = vmatprep.mubr.bf16.mxu0 %v802_v1  ;;  %700 = vmatprep.subr.bf16.mxu1 %v803_v2  ;;  %v767_v3 = vld [vmem:[%s1023_s1] ss:$8 sps:$4 sm:$0xff]   ;;  %v768_v4 = vld [vmem:[%s1023_s1 + $0x14] ss:$8 sps:$4 sm:$0xff]   ;;  %v55_v17 = vlaneseq }
   0x2   :  { %89 = vmatprep.subr.bf16.mxu0 %v765_v0  ;;  %v770_v5 = vld [vmem:[%s1023_s1 + $0x10] ss:$8 sps:$4 sm:$0xff]   ;;  %v771_v6 = vld [vmem:[%s1024_s3] sm:$0xff]   ;;  %v772_v7 = vld [vmem:[%s1024_s3 + $0x8] sm:$0xff]   ;;  %716 = vmatprep.mubr.msk.bf16.mxu1 %vm804_vm1, %v803_v2  ;;  %vm313_vm2 = vcmask 64512   ;;  %vm330_vm3 = vcmask 1043456  }
   0x3   :  { %90 = vmatpush1.bf16.msra.mxu0 %v767_v3  ;;  %701 = vmatpush3.bf16.msra.mxu1 %v771_v6  ;;  %v48_v8 = vld [vmem:[%s1025_s0] sm:$0xf]  ;;  %v773_v9 = vld [vmem:[%s1024_s3 + $0x10] sm:$0xff]   ;;  %v774_v10 = vld [vmem:[%s1024_s3 + $0x18] sm:$0xff]   ;;  %v56_v18 = vshrl.u32 %v55_v17, 7  ;;  %vm579_vm4 = vcmask 130048  }
   0x4   :  { %91 = vmatprep.subr.bf16.mxu0 %v768_v4  ;;  %702 = vmatprep.subr.bf16.mxu1 %v803_v2  ;;  %v775_v11 = vld [vmem:[%s1024_s3 + $0x20] sm:$0xff]   ;;  %v776_v12 = vld [vmem:[%s1024_s3 + $0x28] sm:$0xff]   ;;  %v777_v13 = vld [vmem:[%s1024_s3 + $0x30] sm:$0xff]   ;;  %vm629_vm5 = vcmask 15360  }
   0x5   :  { %v778_v14 = vld [vmem:[%s1026_s5] sm:$0xff]   ;;  %v779_v15 = vld [vmem:[%s1024_s3 + $0x38] sm:$0xff]   ;;  %v780_v16 = vld [vmem:[%s1026_s5 + $0x8] sm:$0xff]   ;;  %v57_v19 = vsub.s32 0, %v56_v18  ;;  %v61_v21 = vsub.s32 1, %v56_v18 }
   0x6   :  { %v53_v20 = vld [vmem:[%s1027_s2] sm:$0x3]  ;;  %v784_v56 = vld [vmem:[%s1030_s8 + $0x8] sm:$0xff]   ;;  %v785_v57 = vld [vmem:[%s1030_s8 + $0x10] sm:$0xff]  }
   0x7   :  { %92 = vmatpush1.bf16.msra.mxu0 %v770_v5  ;;  %703 = vmatpush3.bf16.msra.mxu1 %v772_v7  ;;  %v58_v22 = vrot.slane %v53_v20, %v57_v19  ;;  %v62_v23 = vrot.slane %v53_v20, %v61_v21  ;;  %v649_v34 = vld [vmem:[%s1028_s6] ss:$0 sm:$0xff]  ;;  %v786_v58 = vld [vmem:[%s1030_s8 + $0x18] sm:$0xff]   ;;  %v788_v60 = vld [vmem:[%s1030_s8 + $0x28] sm:$0xff]  }
   0x8   :  { %720 = vmatprep.subr.bf16.mxu0 %v803_v2  ;;  %704 = vmatprep.subr.bf16.mxu1 %v803_v2  ;;  %v321_v46 = vld [vmem:[%s1029_s7] sm:$0xff]  ;;  %v789_v61 = vld [vmem:[%s1030_s8 + $0x30] sm:$0xff]   ;;  %v790_v62 = vld [vmem:[%s1030_s8 + $0x38] sm:$0xff]  }
   0x9   :  { %v654_v47 = vcombine.high %v321_v46, %v321_v46  ;;  %v653_v48 = vcombine.low %v321_v46, %v321_v46  ;;  %v783_v54 = vld [vmem:[%s1030_s8] sm:$0xff]  }
   0xa   :  { %639 = vmatmul.mubr.msk.bf16.vlgmr.msra.gmra.mrb[0].mxu0 %vm85_vm0, %v48_v8  ;;  %v787_v59 = vld [vmem:[%s1030_s8 + $0x20] sm:$0xff]  }
   0xb   :  { %705 = vmatpush3.bf16.msra.mxu1 %v773_v9  ;;  %721 = vmatpush3.bf16.msra.mxu0 %v778_v14  ;;  %v332_v49 = vsel %vm330_vm3, %v653_v48, 0  ;;  %v791_v63 = vld [vmem:[%s1031_s10] sm:$0xff]  }
   0xc   :  { %706 = vmatprep.subr.bf16.mxu1 %v803_v2  ;;  %722 = vmatprep.subr.bf16.mxu0 %v803_v2  ;;  %v640_v6 = vld [vmem:[%s1032_s4] ss:$0 sm:$0xff] }
   0xd   :  { %724 = vmatprep.mubr.msk.bf16.mxu0 %vm804_vm1, %v803_v2  ;;  %v657_v14 = vld [vmem:[%s1034_s9] ss:$0 sm:$0xff] }
   0xe   :  { %v793_v21 = vld [vmem:[%s1033_s12] sm:$0xff]  }
   0xf   :  { %707 = vmatpush3.bf16.msra.mxu1 %v774_v10  ;;  %723 = vmatpush3.bf16.msra.mxu0 %v780_v16 }
  0x10   :  { %708 = vmatprep.subr.bf16.mxu1 %v803_v2  ;;  %655 = vmatprep.subr.msk.bf16.mxu0 %vm330_vm3, %v654_v47 }
  0x13   :  { %709 = vmatpush3.bf16.msra.mxu1 %v775_v11 }
  0x14   :  { %710 = vmatprep.subr.bf16.mxu1 %v803_v2 }
  0x17   :  { %711 = vmatpush3.bf16.msra.mxu1 %v776_v12 }
  0x18   :  { %712 = vmatprep.subr.bf16.mxu1 %v803_v2 }
  0x1b   :  { %713 = vmatpush3.bf16.msra.mxu1 %v777_v13  ;;  %v792_v13 = vld [vmem:[%s1031_s10 + $0x8] sm:$0xff]  }
  0x1c   :  { %714 = vmatprep.subr.bf16.mxu1 %v803_v2 }
  0x1f   :  { %715 = vmatpush3.bf16.msra.mxu1 %v779_v15 }
  0x20   :  { %748 = vmatprep.subr.bf16.mxu1 %v803_v2 }
  0xdd   :  { %v123_v24 = vpop.f32.mrb[0].mxu0 }
  0xde   :  { %v124_v25 = vadd.f32 %v123_v24, %v58_v22  ;;  %v125_v26 = vpop.f32.mrb[1].mxu0 }
  0xdf   :  { %v126_v27 = vadd.f32 %v125_v26, %v62_v23  ;;  %v127_v28 = vpop.f32.mrb[2].mxu0  ;;  %v666_v23 = vld [vmem:[%s1035_s11] ss:$0 sm:$0xff] }
  0xe0   :  { %v130_v29 = vmax.f32 %v124_v25, 0.0  ;;  %v128_v30 = vpop.f32.mrb[3].mxu0 }
  0xe1   :  { %v131_v31 = vmax.f32 %v126_v27, 0.0 }
  0xe2   :  { %v132_v32 = vpack.c.bf16 %v130_v29, %v130_v29 }
  0xe3   :  { %v133_v33 = vpack.c.bf16 %v131_v31, %v131_v31  ;;  %v670_v31 = vld [vmem:[%s1036_s13] ss:$0 sm:$0xff] }
  0xe4   :  { %717 = vmatmul.mubr.bf16.vlgmr.msra.gmra.mrb[0].mxu1 %v132_v32 }
  0xe5   :  { %725 = vmatmul.mubr.msk.bf16.vlgmr.msra.gmra.mrb[4].mxu0 %vm85_vm0, %v133_v33  ;;  %752 = vmatprep.mubr.msk.bf16.mxu1 %vm804_vm1, %v803_v2 }
  0xe6   :  { %369 = vmatprep.mubr.bf16.mxu0 %v802_v1  ;;  %338 = vmatpush1.bf16.msra.mxu0 %v332_v49 }
  0xe7   :  { %728 = vmatprep.subr.bf16.mxu0 %v803_v2  ;;  %749 = vmatpush3.bf16.msra.mxu1 %v791_v63 }
  0xe8   :  { %750 = vmatprep.subr.bf16.mxu1 %v803_v2 }
  0xeb   :  { %751 = vmatpush3.bf16.msra.mxu1 %v792_v13 }
  0xec   :  { %756 = vmatprep.subr.bf16.mxu1 %v803_v2 }
 0x1b7   :  { %v952_v35 = vpop.f32.mrb[0].mxu1 }
 0x1b8   :  { %v718_v36 = vpop.f32.mrb[1].mxu1  ;;  %v306_v37 = vpop.f32.mrb[4].mxu0  ;;  %v240_v7 = vadd.f32 %v640_v6, %v952_v35 }
 0x1b9   :  { %v307_v38 = vadd.f32 %v649_v34, %v306_v37  ;;  %v242_v39 = vpop.f32.mrb[2].mxu1  ;;  %v726_v40 = vpop.f32.mrb[5].mxu0 }
 0x1ba   :  { %v719_v41 = vpop.f32.mrb[3].mxu1  ;;  %v309_v42 = vpop.f32.mrb[6].mxu0  ;;  %v245_v9 = vmax.f32 %v240_v7, 0.0 }
 0x1bb   :  { %v312_v43 = vmax.f32 %v307_v38, 0.0  ;;  %v727_v44 = vpop.f32.mrb[7].mxu0 }
 0x1bd   :  { %v314_v45 = vsel %vm313_vm2, %v312_v43, -inf }
 0x1be   :  { %315 = vmax.xlane.f32.xlu0 %v314_v45 }
 0x24b   :  { %v316_v50 = vpop.xlane.xlu0 %315 }
 0x24c   :  { %v317_v51 = vsub.f32 %v312_v43, %v316_v50 }
 0x24e   :  { %v318_v52 = vmul.f32 1.442695, %v317_v51 }
 0x250   :  { %794 = vpow2.f32 %v318_v52 }
 0x25a   :  { %v795_v53 = vpop.eup %794 }
 0x25b   :  { %v320_v55 = vpack.c.bf16 %v795_v53, %v795_v53 }
 0x25d   :  { %656 = vmatmul.mubr.msk.bf16.vlgmr.msra.gmra.mrb[8].mxu0 %vm313_vm2, %v320_v55 }
 0x25e   :  { %729 = vmatpush3.bf16.msra.mxu0 %v783_v54  ;;  %744 = vmatprep.mubr.msk.bf16.mxu0 %vm804_vm1, %v803_v2 }
 0x25f   :  { %730 = vmatprep.subr.bf16.mxu0 %v803_v2 }
 0x262   :  { %731 = vmatpush3.bf16.msra.mxu0 %v784_v56 }
 0x263   :  { %732 = vmatprep.subr.bf16.mxu0 %v803_v2 }
 0x266   :  { %733 = vmatpush3.bf16.msra.mxu0 %v785_v57 }
 0x267   :  { %734 = vmatprep.subr.bf16.mxu0 %v803_v2 }
 0x26a   :  { %735 = vmatpush3.bf16.msra.mxu0 %v786_v58 }
 0x26b   :  { %736 = vmatprep.subr.bf16.mxu0 %v803_v2 }
 0x26e   :  { %737 = vmatpush3.bf16.msra.mxu0 %v787_v59 }
 0x26f   :  { %738 = vmatprep.subr.bf16.mxu0 %v803_v2 }
 0x272   :  { %739 = vmatpush3.bf16.msra.mxu0 %v788_v60 }
 0x273   :  { %740 = vmatprep.subr.bf16.mxu0 %v803_v2 }
 0x276   :  { %741 = vmatpush3.bf16.msra.mxu0 %v789_v61 }
 0x277   :  { %742 = vmatprep.subr.bf16.mxu0 %v803_v2 }
 0x27a   :  { %743 = vmatpush3.bf16.msra.mxu0 %v790_v62 }
 0x330   :  { %v371_v0 = vpop.f32.mrb[8].mxu0 }
 0x331   :  { %v373_v1 = vpop.f32.mrb[9].mxu0 }
 0x332   :  { %v378_v3 = vmax.f32 %v373_v1, 1e-30  ;;  %v375_v4 = vpop.f32.mrb[10].mxu0 }
 0x333   :  { %v376_v5 = vpop.f32.mrb[11].mxu0 }
 0x334   :  { %796 = vrcp.f32 %v378_v3 }
 0x33e   :  { %v797_v8 = vpop.eup %796 }
 0x33f   :  { %v380_v10 = vmul.f32 %v797_v8, %v371_v0 }
 0x341   :  { %v381_v11 = vmul.f32 %v380_v10, %v245_v9 }
 0x343   :  { %v382_v12 = vpack.c.bf16 %v381_v11, %v381_v11 }
 0x345   :  { %745 = vmatmul.mubr.bf16.vlgmr.msra.gmra.mrb[12].mxu0 %v382_v12 }
 0x418   :  { %v488_v15 = vpop.f32.mrb[12].mxu0 }
 0x419   :  { %v489_v16 = vadd.f32 %v657_v14, %v488_v15  ;;  %v746_v17 = vpop.f32.mrb[13].mxu0 }
 0x41a   :  { %v491_v18 = vpop.f32.mrb[14].mxu0 }
 0x41b   :  { %v494_v19 = vmax.f32 %v489_v16, 0.0  ;;  %v747_v20 = vpop.f32.mrb[15].mxu0 }
 0x41d   :  { %v495_v22 = vpack.c.bf16 %v494_v19, %v494_v19 }
 0x41f   :  { %753 = vmatmul.mubr.msk.bf16.vlgmr.msra.gmra.mrb[4].mxu1 %vm85_vm0, %v495_v22 }
 0x420   :  { %757 = vmatpush3.bf16.msra.mxu1 %v793_v21  ;;  %758 = vmatprep.mubr.msk.bf16.mxu1 %vm804_vm1, %v803_v2 }
 0x4f2   :  { %v556_v24 = vpop.f32.mrb[4].mxu1 }
 0x4f3   :  { %v557_v25 = vadd.f32 %v666_v23, %v556_v24  ;;  %v754_v26 = vpop.f32.mrb[5].mxu1 }
 0x4f4   :  { %v559_v27 = vpop.f32.mrb[6].mxu1 }
 0x4f5   :  { %v562_v28 = vmax.f32 %v557_v25, 0.0  ;;  %v755_v29 = vpop.f32.mrb[7].mxu1 }
 0x4f7   :  { %v563_v30 = vpack.c.bf16 %v562_v28, %v562_v28 }
 0x4f9   :  { %759 = vmatmul.mubr.msk.bf16.vlgmr.msra.gmra.mrb[8].mxu1 %vm579_vm4, %v563_v30 }
 0x5cc   :  { %v617_v32 = vpop.f32.mrb[8].mxu1 }
 0x5cd   :  { %v618_v33 = vadd.f32 %v670_v31, %v617_v32  ;;  %v760_v2 = vpop.f32.mrb[9].mxu1 }
 0x5ce   :  { %v620_v34 = vpop.f32.mrb[10].mxu1 }
 0x5cf   :  { %v673_v35 = vmul.f32 -1.442695, %v618_v33  ;;  %v761_v36 = vpop.f32.mrb[11].mxu1 }
 0x5d1   :  { %798 = vpow2.f32 %v673_v35 }
 0x5db   :  { %v799_v37 = vpop.eup %798 }
 0x5dc   :  { %v626_v38 = vadd.f32 1.0, %v799_v37 }
 0x5de   :  { %800 = vrcp.f32 %v626_v38 }
 0x5e8   :  { %v801_v39 = vpop.eup %800 }
 0x5e9   :  { %630 = vst.msk [vmem:[%s1037_s14] sm:$0xff] %vm629_vm5, %v801_v39 }

</bundles_post_ra>
